<compile_context>
chip_gen: v7x
topology: tpu7x:2x2x1
jax: 0.10.0
libtpu: 0.0.40
codegen_flags: <defaults>
</compile_context>

<pallas_src>
import functools

import jax
import jax.numpy as jnp
from jax import lax
from jax.experimental import pallas as pl
from jax.experimental.pallas import tpu as pltpu


_LANE = 128
_SPLIT_MIN_BYTES = 4 * 1024 * 1024   # only K-split across 2 TCs when F is this big


def _cdiv(a, b):
    return -(-a // b)


def _round_up(x, m):
    return _cdiv(x, m) * m


def _vmem_caps():
    """(physical VMEM per core or None, feature-tile budget) — generation aware."""
    try:
        cap = int(pltpu.get_tpu_info().vmem_capacity_bytes)
    except Exception:
        return None, 24 << 20                      # unknown chip: stay conservative
    budget = (64 << 20) if cap >= (96 << 20) else (24 << 20)   # v5e/v6e vs v7x
    return cap, budget


def _plan(M, K, itemsize, *, force_ncores=None, force_tk=None):
    """Pick (tk, steps_per_core, ncores) for the K-reduction grid."""
    cap, budget = _vmem_caps()
    k_lanes = _round_up(K, _LANE)
    # Largest lane-aligned K tile whose double-buffered feature block fits budget.
    tk_cap = max(_LANE, (budget // (2 * M * itemsize)) // _LANE * _LANE)

    multicore = (cap is not None) and cap < (96 << 20)   # 64 MiB/TC => v7x (2 TCs)
    if force_ncores is not None:
        ncores = force_ncores
    else:
        ncores = 2 if (multicore and M * K * itemsize >= _SPLIT_MIN_BYTES
                       and K > 2 * _LANE) else 1

    if force_tk is not None:
        tk = _round_up(min(force_tk, k_lanes), _LANE)
    else:
        tk = min(tk_cap, k_lanes)

    if ncores == 2:
        # Even number of total K steps so both cores get identical sub-grids and
        # the single ragged tail tile stays the last *global* step.
        tk = min(tk, _round_up(_cdiv(K, 2), _LANE))
        steps = _cdiv(K, tk)
        while steps % 2 != 0 and tk > _LANE:
            tk -= _LANE
            steps = _cdiv(K, tk)
        if steps % 2 != 0:                         # couldn't split cleanly
            ncores = 1
            if force_tk is None:
                tk = min(tk_cap, k_lanes)
            steps = _cdiv(K, tk)
        return tk, steps // ncores, ncores

    steps = _cdiv(K, tk)
    return tk, steps, 1


def _compiler_params(M, tk, itemsize, ncores):
    cap, _ = _vmem_caps()
    # double-buffered feature tiles + accumulator/target/output buffers + slack
    needed = 2 * M * tk * itemsize + 4 * M * M * 4 + (4 << 20)
    limit = max(needed, 32 << 20)
    if cap is not None:
        limit = min(limit, int(cap * 0.85))        # never ask beyond physical VMEM
    sem = ("parallel", "arbitrary") if ncores == 2 else ("arbitrary",)
    return pltpu.CompilerParams(dimension_semantics=sem, vmem_limit_bytes=int(limit))


def _cost(M, K, itemsize, extra_bytes):
    return pl.CostEstimate(flops=2 * M * M * K, transcendentals=0,
                           bytes_accessed=M * K * itemsize + extra_bytes)


def _feature_view(x):
    a, b, c, d = x.shape
    return x.reshape(a * b, c * d), a * b, c * d


def _masked_block(f_ref, global_step, *, k_total, tk):
    """Load the (M, tk) feature tile, zeroing lanes past the true K.

    Zero columns contribute nothing to F @ F.T, so the ragged tail is handled
    entirely in-kernel (a couple of VPU ops) — no padded HBM copy is ever made.
    Emitted only when K is not a multiple of tk.
    """
    blk = f_ref[...]
    if k_total % tk != 0:
        valid = k_total - global_step * tk         # == tk except on the last tile
        col = lax.broadcasted_iota(jnp.int32, blk.shape, 1)
        blk = jnp.where(col < valid, blk, jnp.zeros_like(blk))
    return blk


# ---------------------------------------------------------------------------
# Kernel 1: standalone gram matrix G = (F @ F.T) * scale (single-core path).
# Accumulates directly into the VMEM-resident output block.
# ---------------------------------------------------------------------------
def _gram_kernel(f_ref, g_ref, *, k_total, tk, scale):
    k = pl.program_id(0)

    @pl.when(k == 0)
    def _():
        g_ref[...] = jnp.zeros_like(g_ref)

    blk = _masked_block(f_ref, k, k_total=k_total, tk=tk)     # (M, tk), native dtype
    g_ref[...] += lax.dot_general(
        blk, blk,
        dimension_numbers=(((1,), (1,)), ((), ())),           # F @ F.T, no transpose
        preferred_element_type=jnp.float32)

    @pl.when(k == pl.num_programs(0) - 1)
    def _():
        g_ref[...] *= scale


# ---------------------------------------------------------------------------
# Kernel 2: fused gram + MSE (single-core path).  G never round-trips HBM.
# ---------------------------------------------------------------------------
def _style_loss_fused_kernel(f_ref, t_ref, loss_ref, acc_ref, *,
                             k_total, tk, scale, inv_n):
    k = pl.program_id(0)

    @pl.when(k == 0)
    def _():
        acc_ref[...] = jnp.zeros_like(acc_ref)

    blk = _masked_block(f_ref, k, k_total=k_total, tk=tk)
    acc_ref[...] += lax.dot_general(
        blk, blk,
        dimension_numbers=(((1,), (1,)), ((), ())),
        preferred_element_type=jnp.float32)

    @pl.when(k == pl.num_programs(0) - 1)
    def _():
        diff = acc_ref[...] * scale - t_ref[...]
        loss_ref[0, 0] = jnp.sum(diff * diff) * inv_n


# ---------------------------------------------------------------------------
# Kernel 3: 2-TensorCore K-split — each core accumulates its own raw partial
# F_c @ F_c.T into its (1, M, M) output block.  Combine/scale/MSE happen in a
# trivial JAX epilogue (M^2 is at most ~1 MiB for style layers).
# ---------------------------------------------------------------------------
def _gram_split_kernel(f_ref, g_ref, *, k_total, tk, steps_per_core):
    k = pl.program_id(1)

    @pl.when(k == 0)
    def _():
        g_ref[...] = jnp.zeros_like(g_ref)

    gstep = pl.program_id(0) * steps_per_core + k
    blk = _masked_block(f_ref, gstep, k_total=k_total, tk=tk)
    g_ref[0] += lax.dot_general(
        blk, blk,
        dimension_numbers=(((1,), (1,)), ((), ())),
        preferred_element_type=jnp.float32)


def _gram_partials(feats, M, K, tk, steps, itemsize):
    return pl.pallas_call(
        functools.partial(_gram_split_kernel, k_total=K, tk=tk, steps_per_core=steps),
        out_shape=jax.ShapeDtypeStruct((2, M, M), jnp.float32),
        grid_spec=pltpu.PrefetchScalarGridSpec(
            num_scalar_prefetch=0,
            grid=(2, steps),
            in_specs=[pl.BlockSpec((M, tk), lambda c, k: (0, c * steps + k))],
            out_specs=pl.BlockSpec((1, M, M), lambda c, k: (c, 0, 0)),
        ),
        compiler_params=_compiler_params(M, tk, itemsize, 2),
        cost_estimate=_cost(M, K, itemsize, 2 * M * M * 4),
    )(feats)


# ---------------------------------------------------------------------------
# Public wrappers.
# ---------------------------------------------------------------------------
def _gram_matrix_impl(x, *, force_ncores=None, force_tk=None):
    a, b, c, d = x.shape
    feats, M, K = _feature_view(x)
    itemsize = jnp.dtype(x.dtype).itemsize
    scale = 1.0 / float(a * b * c * d)
    tk, steps, ncores = _plan(M, K, itemsize,
                              force_ncores=force_ncores, force_tk=force_tk)

    if ncores == 1:
        return pl.pallas_call(
            functools.partial(_gram_kernel, k_total=K, tk=tk, scale=scale),
            out_shape=jax.ShapeDtypeStruct((M, M), jnp.float32),
            grid_spec=pltpu.PrefetchScalarGridSpec(
                num_scalar_prefetch=0,
                grid=(steps,),
                in_specs=[pl.BlockSpec((M, tk), lambda k: (0, k))],
                out_specs=pl.BlockSpec((M, M), lambda k: (0, 0)),
            ),
            compiler_params=_compiler_params(M, tk, itemsize, 1),
            cost_estimate=_cost(M, K, itemsize, M * M * 4),
        )(feats)

    partials = _gram_partials(feats, M, K, tk, steps, itemsize)
    return (partials[0] + partials[1]) * scale


def _style_loss_impl(x, target_g, *, force_ncores=None, force_tk=None):
    a, b, c, d = x.shape
    feats, M, K = _feature_view(x)
    itemsize = jnp.dtype(x.dtype).itemsize
    scale = 1.0 / float(a * b * c * d)
    inv_n = 1.0 / float(M * M)
    tk, steps, ncores = _plan(M, K, itemsize,
                              force_ncores=force_ncores, force_tk=force_tk)

    if ncores == 1:
        loss = pl.pallas_call(
            functools.partial(_style_loss_fused_kernel, k_total=K, tk=tk,
                              scale=scale, inv_n=inv_n),
            out_shape=jax.ShapeDtypeStruct((1, 1), jnp.float32),
            grid_spec=pltpu.PrefetchScalarGridSpec(
                num_scalar_prefetch=0,
                grid=(steps,),
                in_specs=[
                    pl.BlockSpec((M, tk), lambda k: (0, k)),
                    # Grid-invariant target, read only on the last step:
                    # single-buffer it to reclaim VMEM for bigger K tiles.
                    pl.BlockSpec((M, M), lambda k: (0, 0),
                                 pipeline_mode=pl.Buffered(1)),
                ],
                out_specs=pl.BlockSpec((1, 1), lambda k: (0, 0)),
                scratch_shapes=[pltpu.VMEM((M, M), jnp.float32)],
            ),
            compiler_params=_compiler_params(M, tk, itemsize, 1),
            cost_estimate=_cost(M, K, itemsize, M * M * 4 + 4),
        )(feats, target_g)
        return loss[0, 0]

    # 2-TC K-split: kernel produces raw partials; tiny combine + MSE epilogue.
    partials = _gram_partials(feats, M, K, tk, steps, itemsize)
    g = (partials[0] + partials[1]) * scale
    diff = g - target_g
    return jnp.sum(diff * diff) * inv_n


gram_matrix = jax.jit(_gram_matrix_impl, static_argnames=("force_ncores", "force_tk"))
style_loss_value = jax.jit(_style_loss_impl, static_argnames=("force_ncores", "force_tk"))


# ---------------------------------------------------------------------------
# StyleLoss module equivalent.
# ---------------------------------------------------------------------------
class StyleLoss:
    def __init__(self, target_feature):
        # target_feature: (a, b, c, d) detached target activation.
        self.target = gram_matrix(target_feature)
        self.loss = None

    def __call__(self, x):
        # Fused gram + MSE; G of x never leaves VMEM (single-core path).
        self.loss = style_loss_value(x, self.target)
        return x  # StyleLoss.forward passes the input through unchanged


if __name__ == "__main__":
    key = jax.random.PRNGKey(0)
    k_t, k_x, k_t2, k_x2, k_t3, k_x3, k_t4, k_x4 = jax.random.split(key, 8)

    def ref_gram(v):
        a, b, c, d = v.shape
        f = v.reshape(a * b, c * d)
        return (f @ f.T) / (a * b * c * d)

    def ref_loss(v, t):
        return jnp.mean((ref_gram(v) - ref_gram(t)) ** 2)

    def check(name, got, want, rtol=1e-4, atol=1e-6):
        got = jax.block_until_ready(got)
        assert jnp.allclose(got, want, rtol=rtol, atol=atol), (name, got, want)

    # 1) Module behaviour on the canonical small shape (K multiple of 128).
    shape = (2, 4, 16, 16)
    target_feature = jax.random.normal(k_t, shape, dtype=jnp.float32)
    x = jax.random.normal(k_x, shape, dtype=jnp.float32)
    style_loss = StyleLoss(target_feature)
    out = style_loss(x)
    jax.block_until_ready(out)
    check("loss", style_loss.loss, ref_loss(x, target_feature))
    check("gram", gram_matrix(x), ref_gram(x))
    assert jnp.array_equal(out, x)

    # 2) Ragged K (c*d = 100): exercises the in-kernel tail masking (no pad).
    shape2 = (1, 8, 10, 10)
    t2 = jax.random.normal(k_t2, shape2, dtype=jnp.float32)
    x2 = jax.random.normal(k_x2, shape2, dtype=jnp.float32)
    check("gram ragged", gram_matrix(x2), ref_gram(x2))
    check("loss ragged", style_loss_value(x2, gram_matrix(t2)), ref_loss(x2, t2))

    # 3) Multi-step fused K reduction with a ragged last tile (forced small tk).
    shape3 = (2, 4, 24, 20)          # K = 480 -> 4 tiles of 128, last one masked
    t3 = jax.random.normal(k_t3, shape3, dtype=jnp.float32)
    x3 = jax.random.normal(k_x3, shape3, dtype=jnp.float32)
    tg3 = gram_matrix(t3, force_tk=128)
    check("gram multi", gram_matrix(x3, force_tk=128), ref_gram(x3))
    check("loss multi", style_loss_value(x3, tg3, force_tk=128), ref_loss(x3, t3))

    # 4) 2-core K-split path (auto-enabled on v7x-like chips; forced here so it
    #    is exercised and verified regardless of the host chip).
    shape4 = (2, 8, 24, 20)          # M = 16, K = 480 -> 4 tiles, 2 per core
    t4 = jax.random.normal(k_t4, shape4, dtype=jnp.float32)
    x4 = jax.random.normal(k_x4, shape4, dtype=jnp.float32)
    tg4 = gram_matrix(t4, force_ncores=2, force_tk=128)
    check("gram split", gram_matrix(x4, force_ncores=2, force_tk=128), ref_gram(x4))
    check("loss split", style_loss_value(x4, tg4, force_ncores=2, force_tk=128),
          ref_loss(x4, t4))

    print("KERNEL_OK")
</pallas_src>

<mosaic_0001>
module attributes {stable_mosaic.version = 11 : i64} {
  func.func @_gram_kernel(%arg0: i32, %arg1: memref<8x256xf32, #tpu.memory_space<vmem>>, %arg2: memref<8x8xf32, #tpu.memory_space<vmem>>) attributes {dimension_semantics = [#tpu.dimension_semantics<arbitrary>], iteration_bounds = array<i64: 1>, scalar_prefetch = 0 : i64, scratch_operands = 0 : i64, tpu.core_type = #tpu.core_type<tc>, window_params = [{transform_indices = @transform_0, window_bounds = array<i64: 8, 256>}, {pipeline_mode = #tpu.pipeline_mode<synchronous>, transform_indices = @transform_1, window_bounds = array<i64: 8, 8>}]} {
    %c0_i32 = arith.constant 0 : i32
    %0 = arith.cmpi eq, %arg0, %c0_i32 : i32
    %1 = arith.extui %0 : i1 to i32
    %c0_i32_0 = arith.constant 0 : i32
    %2 = arith.cmpi ne, %1, %c0_i32_0 : i32
    scf.if %2 {
      %cst_8 = arith.constant 0.000000e+00 : f32
      %11 = vector.broadcast %cst_8 : f32 to vector<8x8xf32>
      %c0_9 = arith.constant 0 : index
      %c0_10 = arith.constant 0 : index
      %12 = vector.load %arg2[%c0_9, %c0_10] : memref<8x8xf32, #tpu.memory_space<vmem>>, vector<8x8xf32>
      tpu.vector_store %arg2[%c0_9, %c0_10], %11 {strides = array<i32>} : memref<8x8xf32, #tpu.memory_space<vmem>>, vector<8x8xf32>,
    } else {
    }
    %c0 = arith.constant 0 : index
    %c0_1 = arith.constant 0 : index
    %3 = vector.load %arg1[%c0, %c0_1] : memref<8x256xf32, #tpu.memory_space<vmem>>, vector<8x256xf32>
    %c0_2 = arith.constant 0 : index
    %c0_3 = arith.constant 0 : index
    %4 = vector.load %arg2[%c0_2, %c0_3] : memref<8x8xf32, #tpu.memory_space<vmem>>, vector<8x8xf32>
    %cst = arith.constant dense<0.000000e+00> : vector<8x8xf32>
    %5 = tpu.matmul %3, %3, %cst {dimension_numbers = #tpu.dot_dimension_numbers<[1], [1], [0], [0], [0, 0, 1, 0], [], []>} : vector<8x256xf32>, vector<8x256xf32>, vector<8x8xf32> -> vector<8x8xf32>
    %6 = arith.addf %4, %5 : vector<8x8xf32>
    %c0_4 = arith.constant 0 : index
    %c0_5 = arith.constant 0 : index
    %7 = vector.load %arg2[%c0_4, %c0_5] : memref<8x8xf32, #tpu.memory_space<vmem>>, vector<8x8xf32>
    tpu.vector_store %arg2[%c0_4, %c0_5], %6 {strides = array<i32>} : memref<8x8xf32, #tpu.memory_space<vmem>>, vector<8x8xf32>,
    %c0_i32_6 = arith.constant 0 : i32
    %8 = arith.cmpi eq, %arg0, %c0_i32_6 : i32
    %9 = arith.extui %8 : i1 to i32
    %c0_i32_7 = arith.constant 0 : i32
    %10 = arith.cmpi ne, %9, %c0_i32_7 : i32
    scf.if %10 {
      %c0_8 = arith.constant 0 : index
      %c0_9 = arith.constant 0 : index
      %11 = vector.load %arg2[%c0_8, %c0_9] : memref<8x8xf32, #tpu.memory_space<vmem>>, vector<8x8xf32>
      %cst_10 = arith.constant 4.8828125E-4 : f32
      %12 = vector.broadcast %cst_10 : f32 to vector<8x8xf32>
      %13 = arith.mulf %11, %12 : vector<8x8xf32>
      %c0_11 = arith.constant 0 : index
      %c0_12 = arith.constant 0 : index
      %14 = vector.load %arg2[%c0_11, %c0_12] : memref<8x8xf32, #tpu.memory_space<vmem>>, vector<8x8xf32>
      tpu.vector_store %arg2[%c0_11, %c0_12], %13 {strides = array<i32>} : memref<8x8xf32, #tpu.memory_space<vmem>>, vector<8x8xf32>,
    } else {
    }
    return
  }
  func.func @transform_0(%arg0: i32) -> (i32, i32) {
    %c0_i32 = arith.constant 0 : i32
    %c0_i32_0 = arith.constant 0 : i32
    return %c0_i32, %arg0 : i32, i32
  }
  func.func @transform_1(%arg0: i32) -> (i32, i32) {
    %c0_i32 = arith.constant 0 : i32
    %c0_i32_0 = arith.constant 0 : i32
    %c0_i32_1 = arith.constant 0 : i32
    return %c0_i32, %c0_i32_0 : i32, i32
  }
}

</mosaic_0001>

<bundles_post_ra>
// kernel: _gram_matrix_impl.1
= control target key start
LH: loop header
LB: loop body
LE: loop exit
PB: predicated region body
PF: predicated region fallthrough
CT: control target
= control target key end

     0   :  { %vm13_vm0 = vcmask 64512   ;;  %s170_s0 = inlined_call_operand.vmem [shape: f32[8,256], index: 0, kind: input, shape index: {}]   ;;  %s171_s1 = inlined_call_operand.hbm [shape: f32[8,8], index: 1, kind: output, shape index: {}]  }
   0x1   :  { %v16_v0 = vld [vmem:[%s170_s0 + $0x8] sm:$0xff]  ;;  %v15_v1 = vld [vmem:[%s170_s0] sm:$0xff] }
   0x2   :  { %6 = vsyncpa [#allocation3], 0  ;;  %18 = vmatprep.subr.mxu0 %v16_v0  ;;  %82 = vmatprep.mubr.f32.mxu0 %v16_v0  ;;  %v137_v2 = vmov 0.0   ;;  %s138_s10 = smov [#allocation2]  }
   0x3   :  { %14 = vst.msk [vmem:[#allocation2] sm:$0xff] %vm13_vm0, %v137_v2  ;;  %19 = vmatpush1.xpose.msra.mxu0 %v15_v1  ;;  %s103_s11 = sshll.u32 %s138_s10, 4  ;;  %s104_s11 = int_to_ptr.vmem [resolvable:$true] %s103_s11 }
   0x4   :  { %s113_s0 = scalar_lea.vmem %s104_s11, 128  ;;  %p118_p1 = scmp.lt.s32.totalorder %s104_s11, %s104_s11 }
   0x5   :  { %p114_p0 = scmp.ne.s32.totalorder %s104_s11, %s113_s0  ;;  %p119_p2 = scmp.lt.s32.totalorder %s113_s0, %s113_s0 }
   0x6   :  { %83 = vmatmul.mubr.f32.vlgmr.msra.gmra.mrb[0].mxu0 %v15_v1 }
   0x7   :  { %p120_p3 = por %p119_p2, %p118_p1 }
   0x9   :  { %p121_p4 = pnand %p120_p3, %p114_p0 }
   0xa   :  { %v17_v3 = vld [vmem:[#allocation2] sm:$0xff] }
  0xd9   :  { %v84_v4 = vpop.f32.mrb[0].mxu0 }
  0xda   :  { %v88_v5 = vadd.f32 %v84_v4, %v17_v3  ;;  %v86_v6 = vpop.f32.mrb[1].mxu0 }
  0xdc   :  { %90 = vst.msk [vmem:[#allocation2] sm:$0xff] %vm13_vm0, %v88_v5 }
  0xe3   :  { %v94_v7 = vld [vmem:[#allocation2] sm:$0xff] }
  0xe4   :  { %v95_v8 = vmul.f32 0.00048828125, %v94_v7 }
  0xe6   :  { %96 = vst.msk [vmem:[#allocation2] sm:$0xff] %vm13_vm0, %v95_v8 }
  0xe7   :  { %124 = shalt.err (!%p121_p4)
}
  0xe8   :  { %s125_s14 = scalar_lea.hbm %s171_s1, 128 }
  0xe9   :  { %p126_p5 = scmp.ne.s32.totalorder %s171_s1, %s125_s14  ;;  %p129_p6 = scmp.lt.u32.totalorder %s125_s14, %s171_s1 }
  0xeb   :  { %p131_p7 = pnand %p129_p6, %p126_p5 }
  0xed   :  { %134 = shalt.err (!%p131_p7)
}
  0xee   :  { %106 = dma.vmem_to_hbm [thread:$0]  %s104_s11, 128, %s171_s1, [#allocation3]  }
  0xef   :  { %135 = dma.done.wait [#allocation3], 128  }
  0xf0   :  { %136 = vsyncadd [#allocation3], 4294967168 }
  0xf1   :  { %110 = vsyncpa [#allocation3], 1 }

</bundles_post_ra>
